<compile_context>
chip_gen: v7x
topology: tpu7x:2x2x1
jax: 0.10.0
libtpu: 0.0.40
codegen_flags: <defaults>
</compile_context>

<pallas_src>
import functools

import jax
import jax.numpy as jnp
import numpy as np
from jax.experimental import pallas as pl
from jax.experimental.pallas import tpu as pltpu


def _scores_kernel(enc_ref, hidden_ref, w1_ref, w2_ref, b_ref, v_ref, out_ref):
    # Shapes (per grid step):
    #   enc_ref    (ts*B, 2H)  source dtype   rows ordered s-major, b fastest
    #   hidden_ref (B, H)      bf16
    #   w1_ref     (H, H)      bf16           hidden half of cat(hidden, enc)
    #   w2_ref     (2H, H)     bf16           encoder half of cat(hidden, enc)
    #   b_ref      (1, H)      f32
    #   v_ref      (1, H)      f32
    #   out_ref    (ts, B)     f32            raw (un-normalized) scores
    ts, batch = out_ref.shape
    h = w1_ref.shape[0]

    # Encoder half: one 2-D MXU matmul.  HBM is read once in the source dtype;
    # the VMEM-resident block is cast to bf16 for the MXU, f32 accumulation.
    enc = enc_ref[...].astype(jnp.bfloat16)                         # (ts*B, 2H)
    e_proj = jnp.dot(enc, w2_ref[...],
                     preferred_element_type=jnp.float32)            # (ts*B, H)

    # Hidden half + bias, hoisted to one (B, H) term.  Recomputed every step so
    # the sequence grid axis can stay "parallel" (no cross-step scratch state).
    hb = jnp.dot(hidden_ref[...], w1_ref[...],
                 preferred_element_type=jnp.float32) + b_ref[...]   # (B, H) f32

    # (ts*B, H) -> (ts, B, H): pure leading-dim split (clean when B % 8 == 0).
    energy = jnp.tanh(e_proj.reshape(ts, batch, h) + hb[None, :, :])  # f32

    # v-projection: VPU multiply + lane reduce (an N=1 matmul would waste MXU;
    # MXU has slack anyway — this kernel is HBM/VPU bound).
    scores = jnp.sum(energy * v_ref[...][None, :, :], axis=-1)       # (ts, B)
    out_ref[...] = scores.astype(out_ref.dtype)


def _softmax_kernel(s_ref, o_ref, *, valid_len):
    # s_ref: (S_pad, B) raw scores (padded tail rows may hold garbage from the
    # ragged last enc block).  o_ref: (B, S_pad) normalized attention.
    x = s_ref[...].T                                                 # (B, S_pad)
    if valid_len != x.shape[-1]:
        col = jax.lax.broadcasted_iota(jnp.int32, x.shape, 1)
        x = jnp.where(col < valid_len, x, jnp.float32(-1e30))        # mask pad/garbage
    m = jnp.max(x, axis=-1, keepdims=True)
    e = jnp.exp(x - m)
    # Exact divide: rows sum to 1 to f32 precision (review correctness concern).
    o_ref[...] = (e / jnp.sum(e, axis=-1, keepdims=True)).astype(o_ref.dtype)


def _choose_seq_tile(seq_len, batch, two_h, enc_itemsize, seq_tile):
    """Pick the sequence-tile length ts and the number of grid steps."""
    if seq_tile is None:
        target = 2 * 1024 * 1024                      # ~2 MiB streamed enc block
        row_bytes = max(batch * two_h * enc_itemsize, 1)
        seq_tile = max(8, target // row_bytes)
    ts = int(seq_tile)
    if ts >= seq_len:
        return seq_len, 1                             # one block == full extents
    ts = max(8, (ts // 8) * 8)                        # (ts, B) out block: ts % 8 == 0
    return ts, int(pl.cdiv(seq_len, ts))


def attention_forward(encoder_states, hidden, cell, w_attn, b_attn, w_v,
                      *, seq_tile=None):
    """encoder_states: (S, B, 2H), hidden: (B, H), cell unused (matches PyTorch)."""
    del cell  # unused by the reference forward
    S, B, twoH = encoder_states.shape
    H = hidden.shape[1]
    assert twoH == 2 * H
    assert w_attn.shape == (H, 3 * H)

    # Free reshape (merges leading dims, no transpose, no copy, no dtype pass).
    enc2d = encoder_states.reshape(S * B, twoH)                     # (S*B, 2H)

    w_t = w_attn.T                                                  # (3H, H)
    w1 = w_t[:H, :].astype(jnp.bfloat16)                            # hidden half of cat
    w2 = w_t[H:, :].astype(jnp.bfloat16)                            # encoder half of cat
    b2d = b_attn.reshape(1, H).astype(jnp.float32)
    v2d = w_v.reshape(1, H).astype(jnp.float32)
    hid = hidden.astype(jnp.bfloat16)

    enc_bpe = encoder_states.dtype.itemsize
    ts, ns = _choose_seq_tile(S, B, twoH, enc_bpe, seq_tile)
    s_pad = ts * ns

    # VMEM footprint estimate: double-buffered enc/out blocks + resident weights
    # + in-kernel f32 temporaries.  Only raise the scoped-VMEM limit when needed
    # and keep the request below v7x's 64 MiB physical VMEM.
    enc_blk = ts * B * twoH * enc_bpe
    out_blk = ts * B * 4
    weights = (H * H + twoH * H + B * H) * 2 + 2 * H * 4
    temps = ts * B * (twoH * 2 + 2 * H * 4)
    vmem_est = 2 * (enc_blk + out_blk + weights) + temps
    cp_kwargs = dict(dimension_semantics=("parallel",))
    if vmem_est > 12 * 1024 * 1024:
        cp_kwargs["vmem_limit_bytes"] = int(
            min(max(vmem_est * 3 // 2, 32 * 1024 * 1024), 46 * 1024 * 1024))

    flops = 2 * s_pad * B * twoH * H + ns * 2 * B * H * H + 4 * s_pad * B * H
    transcendentals = s_pad * B * H
    bytes_accessed = (S * B * twoH * enc_bpe
                      + (H * H + twoH * H + B * H) * 2 + 2 * H * 4
                      + s_pad * B * 4)

    scores_sb = pl.pallas_call(
        _scores_kernel,
        out_shape=jax.ShapeDtypeStruct((s_pad, B), jnp.float32),
        grid_spec=pltpu.PrefetchScalarGridSpec(
            num_scalar_prefetch=0,
            grid=(ns,),
            in_specs=[
                pl.BlockSpec((ts * B, twoH), lambda s: (s, 0)),     # enc (flattened)
                pl.BlockSpec((B, H), lambda s: (0, 0)),             # hidden
                pl.BlockSpec((H, H), lambda s: (0, 0)),             # w1
                pl.BlockSpec((twoH, H), lambda s: (0, 0)),          # w2
                pl.BlockSpec((1, H), lambda s: (0, 0)),             # bias
                pl.BlockSpec((1, H), lambda s: (0, 0)),             # v
            ],
            out_specs=pl.BlockSpec((ts, B), lambda s: (s, 0)),      # raw scores
        ),
        compiler_params=pltpu.CompilerParams(**cp_kwargs),
        cost_estimate=pl.CostEstimate(
            flops=flops,
            transcendentals=transcendentals,
            bytes_accessed=bytes_accessed,
        ),
    )(enc2d, hid, w1, w2, b2d, v2d)

    # Tiny fix-up kernel: mask the ragged tail, transpose, exact softmax.
    probs = pl.pallas_call(
        functools.partial(_softmax_kernel, valid_len=S),
        out_shape=jax.ShapeDtypeStruct((B, s_pad), jnp.float32),
    )(scores_sb)

    return probs[:, :S]


def attention_reference(encoder_states, hidden, w_attn, b_attn, w_v):
    """Pure-JAX (f32) mirror of the PyTorch forward, for validation."""
    S, B, _ = encoder_states.shape
    H = hidden.shape[1]
    h_rep = jnp.broadcast_to(hidden[:, None, :], (B, S, H))
    enc = jnp.transpose(encoder_states, (1, 0, 2))
    cat = jnp.concatenate([h_rep, enc], axis=2)               # (B, S, 3H)
    energy = jnp.tanh(cat @ w_attn.T + b_attn)                # (B, S, H)
    scores = (energy @ w_v.T)[..., 0]                         # (B, S)
    return jax.nn.softmax(scores, axis=1)


if __name__ == "__main__":
    hidden_size = 32
    batch = 16  # the module spec uses batch_size = 16

    key = jax.random.PRNGKey(0)
    k1, k2, k3 = jax.random.split(key, 3)

    # deterministic synthetic parameters (shapes from the nn.Linear definitions)
    bound_attn = 1.0 / np.sqrt(3 * hidden_size)
    w_attn = jax.random.uniform(
        k1, (hidden_size, 3 * hidden_size), jnp.float32, -bound_attn, bound_attn)
    b_attn = jax.random.uniform(
        k2, (hidden_size,), jnp.float32, -bound_attn, bound_attn)
    bound_v = 1.0 / np.sqrt(hidden_size)
    w_v = jax.random.uniform(k3, (1, hidden_size), jnp.float32, -bound_v, bound_v)

    def run_case(seq_len, seq_tile):
        ka, kb, kc = jax.random.split(jax.random.fold_in(key, seq_len), 3)
        enc = jax.random.normal(ka, (seq_len, batch, 2 * hidden_size), jnp.float32)
        hid = jax.random.normal(kb, (batch, hidden_size), jnp.float32)
        cll = jax.random.normal(kc, (batch, hidden_size), jnp.float32)  # unused
        out = attention_forward(enc, hid, cll, w_attn, b_attn, w_v, seq_tile=seq_tile)
        out = jax.block_until_ready(out)
        ref = attention_reference(enc, hid, w_attn, b_attn, w_v)
        assert out.shape == (batch, seq_len)
        # bf16 MXU operands vs f32 reference => modest tolerance; exact softmax divide
        # => rows sum to 1 at f32 precision.
        assert np.allclose(np.asarray(out), np.asarray(ref), atol=2e-2, rtol=2e-2)
        assert np.allclose(np.asarray(out).sum(axis=1), 1.0, atol=1e-5)

    run_case(20, None)   # single-block path (block == full extents)
    run_case(200, 64)    # multi-tile grid path with a masked ragged tail

    print("KERNEL_OK")
</pallas_src>

<mosaic_0001>
module attributes {stable_mosaic.version = 11 : i64} {
  func.func @_scores_kernel(%arg0: i32, %arg1: memref<320x64xf32, #tpu.memory_space<vmem>>, %arg2: memref<16x32xbf16, #tpu.memory_space<vmem>>, %arg3: memref<32x32xbf16, #tpu.memory_space<vmem>>, %arg4: memref<64x32xbf16, #tpu.memory_space<vmem>>, %arg5: memref<1x32xf32, #tpu.memory_space<vmem>>, %arg6: memref<1x32xf32, #tpu.memory_space<vmem>>, %arg7: memref<20x16xf32, #tpu.memory_space<vmem>>) attributes {dimension_semantics = [#tpu.dimension_semantics<parallel>], iteration_bounds = array<i64: 1>, scalar_prefetch = 0 : i64, scratch_operands = 0 : i64, tpu.core_type = #tpu.core_type<tc>, window_params = [{transform_indices = @transform_0, window_bounds = array<i64: 320, 64>}, {pipeline_mode = #tpu.pipeline_mode<synchronous>, transform_indices = @transform_1, window_bounds = array<i64: 16, 32>}, {pipeline_mode = #tpu.pipeline_mode<synchronous>, transform_indices = @transform_2, window_bounds = array<i64: 32, 32>}, {pipeline_mode = #tpu.pipeline_mode<synchronous>, transform_indices = @transform_3, window_bounds = array<i64: 64, 32>}, {pipeline_mode = #tpu.pipeline_mode<synchronous>, transform_indices = @transform_4, window_bounds = array<i64: 1, 32>}, {pipeline_mode = #tpu.pipeline_mode<synchronous>, transform_indices = @transform_5, window_bounds = array<i64: 1, 32>}, {transform_indices = @transform_6, window_bounds = array<i64: 20, 16>}]} {
    %c0 = arith.constant 0 : index
    %c0_0 = arith.constant 0 : index
    %0 = vector.load %arg1[%c0, %c0_0] : memref<320x64xf32, #tpu.memory_space<vmem>>, vector<320x64xf32>
    %1 = arith.truncf %0 : vector<320x64xf32> to vector<320x64xbf16>
    %c0_1 = arith.constant 0 : index
    %c0_2 = arith.constant 0 : index
    %2 = vector.load %arg4[%c0_1, %c0_2] : memref<64x32xbf16, #tpu.memory_space<vmem>>, vector<64x32xbf16>
    %cst = arith.constant dense<0.000000e+00> : vector<320x32xf32>
    %3 = tpu.matmul %1, %2, %cst {dimension_numbers = #tpu.dot_dimension_numbers<[1], [0], [0], [1], [0, 0, 1, 1], [], []>} : vector<320x64xbf16>, vector<64x32xbf16>, vector<320x32xf32> -> vector<320x32xf32>
    %c0_3 = arith.constant 0 : index
    %c0_4 = arith.constant 0 : index
    %4 = vector.load %arg2[%c0_3, %c0_4] : memref<16x32xbf16, #tpu.memory_space<vmem>>, vector<16x32xbf16>
    %c0_5 = arith.constant 0 : index
    %c0_6 = arith.constant 0 : index
    %5 = vector.load %arg3[%c0_5, %c0_6] : memref<32x32xbf16, #tpu.memory_space<vmem>>, vector<32x32xbf16>
    %cst_7 = arith.constant dense<0.000000e+00> : vector<16x32xf32>
    %6 = tpu.matmul %4, %5, %cst_7 {dimension_numbers = #tpu.dot_dimension_numbers<[1], [0], [0], [1], [0, 0, 1, 1], [], []>} : vector<16x32xbf16>, vector<32x32xbf16>, vector<16x32xf32> -> vector<16x32xf32>
    %c0_8 = arith.constant 0 : index
    %c0_9 = arith.constant 0 : index
    %7 = vector.load %arg5[%c0_8, %c0_9] : memref<1x32xf32, #tpu.memory_space<vmem>>, vector<1x32xf32>
    %8 = vector.broadcast %7 : vector<1x32xf32> to vector<16x32xf32>
    %9 = arith.addf %6, %8 : vector<16x32xf32>
    %10 = vector.shape_cast %3 : vector<320x32xf32> to vector<20x16x32xf32>
    %11 = vector.shape_cast %9 : vector<16x32xf32> to vector<1x16x32xf32>
    %12 = vector.broadcast %11 : vector<1x16x32xf32> to vector<20x16x32xf32>
    %13 = arith.addf %10, %12 : vector<20x16x32xf32>
    %14 = math.tanh %13 : vector<20x16x32xf32>
    %c0_10 = arith.constant 0 : index
    %c0_11 = arith.constant 0 : index
    %15 = vector.load %arg6[%c0_10, %c0_11] : memref<1x32xf32, #tpu.memory_space<vmem>>, vector<1x32xf32>
    %16 = vector.shape_cast %15 : vector<1x32xf32> to vector<1x1x32xf32>
    %17 = vector.broadcast %16 : vector<1x1x32xf32> to vector<20x16x32xf32>
    %18 = arith.mulf %14, %17 : vector<20x16x32xf32>
    %cst_12 = arith.constant dense<0.000000e+00> : vector<20x16xf32>
    %19 = vector.multi_reduction <add>, %18, %cst_12 [2] : vector<20x16x32xf32> to vector<20x16xf32>
    %c0_13 = arith.constant 0 : index
    %c0_14 = arith.constant 0 : index
    %20 = vector.load %arg7[%c0_13, %c0_14] : memref<20x16xf32, #tpu.memory_space<vmem>>, vector<20x16xf32>
    tpu.vector_store %arg7[%c0_13, %c0_14], %19 {strides = array<i32>} : memref<20x16xf32, #tpu.memory_space<vmem>>, vector<20x16xf32>,
    return
  }
  func.func @transform_0(%arg0: i32) -> (i32, i32) {
    %c0_i32 = arith.constant 0 : i32
    %c0_i32_0 = arith.constant 0 : i32
    return %arg0, %c0_i32 : i32, i32
  }
  func.func @transform_1(%arg0: i32) -> (i32, i32) {
    %c0_i32 = arith.constant 0 : i32
    %c0_i32_0 = arith.constant 0 : i32
    %c0_i32_1 = arith.constant 0 : i32
    return %c0_i32, %c0_i32_0 : i32, i32
  }
  func.func @transform_2(%arg0: i32) -> (i32, i32) {
    %c0_i32 = arith.constant 0 : i32
    %c0_i32_0 = arith.constant 0 : i32
    %c0_i32_1 = arith.constant 0 : i32
    return %c0_i32, %c0_i32_0 : i32, i32
  }
  func.func @transform_3(%arg0: i32) -> (i32, i32) {
    %c0_i32 = arith.constant 0 : i32
    %c0_i32_0 = arith.constant 0 : i32
    %c0_i32_1 = arith.constant 0 : i32
    return %c0_i32, %c0_i32_0 : i32, i32
  }
  func.func @transform_4(%arg0: i32) -> (i32, i32) {
    %c0_i32 = arith.constant 0 : i32
    %c0_i32_0 = arith.constant 0 : i32
    %c0_i32_1 = arith.constant 0 : i32
    return %c0_i32, %c0_i32_0 : i32, i32
  }
  func.func @transform_5(%arg0: i32) -> (i32, i32) {
    %c0_i32 = arith.constant 0 : i32
    %c0_i32_0 = arith.constant 0 : i32
    %c0_i32_1 = arith.constant 0 : i32
    return %c0_i32, %c0_i32_0 : i32, i32
  }
  func.func @transform_6(%arg0: i32) -> (i32, i32) {
    %c0_i32 = arith.constant 0 : i32
    %c0_i32_0 = arith.constant 0 : i32
    return %arg0, %c0_i32 : i32, i32
  }
}

</mosaic_0001>

<bundles_post_ra>
// kernel: tpu_custom_call.1
= control target key start
LH: loop header
LB: loop body
LE: loop exit
PB: predicated region body
PF: predicated region fallthrough
CT: control target
= control target key end

     0   :  { %vm116_vm0 = vcmask 523264   ;;  %v1162_v22 = vmov 0.0   ;;  %vm1163_vm1 = vmmov 0   ;;  %vm400_vm2 = vcmask 261120   ;;  %s1745_s3 = inlined_call_operand.vmem [shape: bf16[64,32], index: 3, kind: input, shape index: {}]   ;;  %s1746_s0 = inlined_call_operand.vmem [shape: f32[320,64], index: 0, kind: input, shape index: {}]   ;;  %s1747_s2 = inlined_call_operand.vmem [shape: bf16[32,32], index: 2, kind: input, shape index: {}]   ;;  %s1748_s1 = inlined_call_operand.vmem [shape: bf16[16,32], index: 1, kind: input, shape index: {}]   ;;  %s1749_s4 = inlined_call_operand.vmem [shape: f32[1,32], index: 4, kind: input, shape index: {}]   ;;  %s1750_s5 = inlined_call_operand.vmem [shape: f32[1,32], index: 5, kind: input, shape index: {}]   ;;  %s1751_s6 = inlined_call_operand.vmem [shape: f32[20,16], index: 6, kind: output, shape index: {}]  }
   0x1   :  { %v1075_v0 = vld [vmem:[%s1745_s3] sm:$0xff]   ;;  %v1076_v1 = vld [vmem:[%s1745_s3 + $0x8] sm:$0xff]   ;;  %v1077_v2 = vld [vmem:[%s1745_s3 + $0x10] sm:$0xff]   ;;  %vm743_vm3 = vcmask 130112   ;;  %vm916_vm4 = vcmask 1041409   ;;  %vm918_vm5 = vcmask 1042434  }
   0x2   :  { %1009 = vmatprep.subr.bf16.mxu0 %v1075_v0  ;;  %1065 = vmatprep.subr.bf16.mxu1 %v1075_v0  ;;  %v24_v3 = vld [vmem:[%s1746_s0] sm:$0xff]  ;;  %v25_v4 = vld [vmem:[%s1746_s0 + $0x8] sm:$0xff]  ;;  %v1078_v9 = vld [vmem:[%s1745_s3 + $0x18] sm:$0xff]   ;;  %vm920_vm6 = vcmask 1043459   ;;  %vm922_vm7 = vcmask 1044484   ;;  %vm924_vm8 = vcmask 1045509  }
   0x3   :  { %1010 = vmatpush3.bf16.msra.mxu0 %v1075_v0  ;;  %1069 = vmatpush3.bf16.msra.mxu1 %v1075_v0  ;;  %v48_v5 = vld [vmem:[%s1746_s0 + $0xc0] sm:$0xff]  ;;  %v64_v6 = vpack.c.bf16 %v25_v4, %v24_v3  ;;  %v49_v7 = vld [vmem:[%s1746_s0 + $0xc8] sm:$0xff]  ;;  %v26_v10 = vld [vmem:[%s1746_s0 + $0x10] sm:$0xff]  ;;  %vm926_vm9 = vcmask 1046534   ;;  %vm928_vm10 = vcmask 1047559   ;;  %vm943_vm11 = vcmask 130048  }
   0x4   :  { %1011 = vmatprep.subr.bf16.mxu0 %v1076_v1  ;;  %1066 = vmatprep.subr.bf16.mxu1 %v1076_v1  ;;  %v76_v8 = vpack.c.bf16 %v49_v7, %v48_v5  ;;  %v27_v11 = vld [vmem:[%s1746_s0 + $0x18] sm:$0xff]  ;;  %v50_v12 = vld [vmem:[%s1746_s0 + $0xd0] sm:$0xff]  ;;  %v28_v14 = vld [vmem:[%s1746_s0 + $0x20] sm:$0xff]  ;;  %vm946_vm12 = vcmask 125952  }
   0x5   :  { %1017 = vmatprep.mubr.msk.bf16.mxu0 %vm116_vm0, %v64_v6  ;;  %v51_v13 = vld [vmem:[%s1746_s0 + $0xd8] sm:$0xff]  ;;  %v29_v15 = vld [vmem:[%s1746_s0 + $0x28] sm:$0xff]  ;;  %v52_v16 = vld [vmem:[%s1746_s0 + $0xe0] sm:$0xff]  ;;  %v65_v18 = vpack.c.bf16 %v27_v11, %v26_v10 }
   0x6   :  { %1041 = vmatprep.mubr.msk.bf16.mxu1 %vm116_vm0, %v76_v8  ;;  %v53_v17 = vld [vmem:[%s1746_s0 + $0xe8] sm:$0xff]  ;;  %v77_v19 = vpack.c.bf16 %v51_v13, %v50_v12  ;;  %v1079_v20 = vld [vmem:[%s1747_s2] sm:$0xff]   ;;  %v66_v21 = vpack.c.bf16 %v29_v15, %v28_v14  ;;  %v30_v24 = vld [vmem:[%s1746_s0 + $0x30] sm:$0xff] }
   0x7   :  { %1012 = vmatpush3.bf16.msra.mxu0 %v1076_v1  ;;  %1070 = vmatpush3.bf16.msra.mxu1 %v1076_v1  ;;  %v78_v23 = vpack.c.bf16 %v53_v17, %v52_v16  ;;  %v31_v25 = vld [vmem:[%s1746_s0 + $0x38] sm:$0xff]  ;;  %v54_v26 = vld [vmem:[%s1746_s0 + $0xf0] sm:$0xff]  ;;  %v32_v28 = vld [vmem:[%s1746_s0 + $0x40] sm:$0xff] }
   0x8   :  { %1013 = vmatprep.subr.bf16.mxu0 %v1077_v2  ;;  %1067 = vmatprep.subr.bf16.mxu1 %v1077_v2  ;;  %v55_v27 = vld [vmem:[%s1746_s0 + $0xf8] sm:$0xff]  ;;  %v1080_v29 = vld [vmem:[%s1747_s2 + $0x8] sm:$0xff]   ;;  %v56_v31 = vld [vmem:[%s1746_s0 + $0x100] sm:$0xff]  ;;  %v67_v33 = vpack.c.bf16 %v31_v25, %v30_v24 }
   0x9   :  { %v33_v30 = vld [vmem:[%s1746_s0 + $0x48] sm:$0xff]  ;;  %v79_v34 = vpack.c.bf16 %v55_v27, %v54_v26  ;;  %v34_v37 = vld [vmem:[%s1746_s0 + $0x50] sm:$0xff]  ;;  %v35_v38 = vld [vmem:[%s1746_s0 + $0x58] sm:$0xff] }
   0xa   :  { %v57_v32 = vld [vmem:[%s1746_s0 + $0x108] sm:$0xff]  ;;  %v68_v35 = vpack.c.bf16 %v33_v30, %v32_v28  ;;  %v58_v39 = vld [vmem:[%s1746_s0 + $0x110] sm:$0xff]  ;;  %v59_v40 = vld [vmem:[%s1746_s0 + $0x118] sm:$0xff]  ;;  %v69_v45 = vpack.c.bf16 %v35_v38, %v34_v37 }
   0xb   :  { %1014 = vmatpush3.bf16.msra.mxu0 %v1077_v2  ;;  %1071 = vmatpush3.bf16.msra.mxu1 %v1077_v2  ;;  %v80_v36 = vpack.c.bf16 %v57_v32, %v56_v31  ;;  %v36_v41 = vld [vmem:[%s1746_s0 + $0x60] sm:$0xff]  ;;  %v37_v42 = vld [vmem:[%s1746_s0 + $0x68] sm:$0xff]  ;;  %v81_v46 = vpack.c.bf16 %v59_v40, %v58_v39  ;;  %v38_v49 = vld [vmem:[%s1746_s0 + $0x70] sm:$0xff] }
   0xc   :  { %1015 = vmatprep.subr.bf16.mxu0 %v1078_v9  ;;  %1068 = vmatprep.subr.bf16.mxu1 %v1078_v9  ;;  %v60_v43 = vld [vmem:[%s1746_s0 + $0x120] sm:$0xff]  ;;  %v61_v44 = vld [vmem:[%s1746_s0 + $0x128] sm:$0xff]  ;;  %v70_v47 = vpack.c.bf16 %v37_v42, %v36_v41  ;;  %v39_v50 = vld [vmem:[%s1746_s0 + $0x78] sm:$0xff] }
   0xd   :  { %v82_v48 = vpack.c.bf16 %v61_v44, %v60_v43  ;;  %v62_v51 = vld [vmem:[%s1746_s0 + $0x130] sm:$0xff]  ;;  %v63_v52 = vld [vmem:[%s1746_s0 + $0x138] sm:$0xff]  ;;  %v40_v53 = vld [vmem:[%s1746_s0 + $0x80] sm:$0xff]  ;;  %v71_v55 = vpack.c.bf16 %v39_v50, %v38_v49 }
   0xe   :  { %v41_v54 = vld [vmem:[%s1746_s0 + $0x88] sm:$0xff]  ;;  %v83_v56 = vpack.c.bf16 %v63_v52, %v62_v51  ;;  %v42_v58 = vld [vmem:[%s1746_s0 + $0x90] sm:$0xff]  ;;  %v43_v59 = vld [vmem:[%s1746_s0 + $0x98] sm:$0xff] }
   0xf   :  { %1016 = vmatpush3.bf16.msra.mxu0 %v1078_v9  ;;  %1072 = vmatpush3.bf16.msra.mxu1 %v1078_v9  ;;  %v72_v57 = vpack.c.bf16 %v41_v54, %v40_v53  ;;  %v44_v60 = vld [vmem:[%s1746_s0 + $0xa0] sm:$0xff]  ;;  %v45_v61 = vld [vmem:[%s1746_s0 + $0xa8] sm:$0xff]  ;;  %v73_v62 = vpack.c.bf16 %v43_v59, %v42_v58  ;;  %v46_v1 = vld [vmem:[%s1746_s0 + $0xb0] sm:$0xff] }
  0x10   :  { %1057 = vmatprep.subr.bf16.mxu1 %v1162_v22  ;;  %v1081_v63 = vld [vmem:[%s1748_s1] sm:$0xff]   ;;  %v74_v0 = vpack.c.bf16 %v45_v61, %v44_v60  ;;  %v47_v2 = vld [vmem:[%s1746_s0 + $0xb8] sm:$0xff] }
  0x11   :  { %v75_v3 = vpack.c.bf16 %v47_v2, %v46_v1 }
  0x12   :  { %1018 = vmatmul.mubr.msk.bf16.vlgmr.msra.gmra.mrb[0].mxu0 %vm116_vm0, %v65_v18  ;;  %1042 = vmatmul.mubr.msk.bf16.vlgmr.msra.gmra.mrb[0].mxu1 %vm116_vm0, %v77_v19 }
  0x13   :  { %1058 = vmatpush3.bf16.msra.mxu1 %v1079_v20  ;;  %1021 = vmatprep.mubr.msk.bf16.mxu0 %vm116_vm0, %v66_v21 }
  0x14   :  { %1045 = vmatprep.mubr.msk.bf16.mxu1 %vm116_vm0, %v78_v23  ;;  %1059 = vmatprep.subr.bf16.mxu1 %v1162_v22 }
  0x17   :  { %1060 = vmatpush3.bf16.msra.mxu1 %v1080_v29 }
  0x1a   :  { %1022 = vmatmul.mubr.msk.bf16.gmra.mrb[4].mxu0 %vm116_vm0, %v67_v33  ;;  %1046 = vmatmul.mubr.msk.bf16.gmra.mrb[4].mxu1 %vm116_vm0, %v79_v34 }
  0x1b   :  { %1025 = vmatprep.mubr.msk.bf16.mxu0 %vm116_vm0, %v68_v35  ;;  %1049 = vmatprep.mubr.msk.bf16.mxu1 %vm116_vm0, %v80_v36  ;;  %v976_v36 = vld [vmem:[%s1749_s4] ss:$0 sm:$0xff] }
  0x22   :  { %1026 = vmatmul.mubr.msk.bf16.gmra.mrb[8].mxu0 %vm116_vm0, %v69_v45  ;;  %1050 = vmatmul.mubr.msk.bf16.gmra.mrb[8].mxu1 %vm116_vm0, %v81_v46 }
  0x23   :  { %1029 = vmatprep.mubr.msk.bf16.mxu0 %vm116_vm0, %v70_v47  ;;  %1053 = vmatprep.mubr.msk.bf16.mxu1 %vm116_vm0, %v82_v48 }
  0x2a   :  { %1030 = vmatmul.mubr.msk.bf16.gmra.mrb[12].mxu0 %vm116_vm0, %v71_v55  ;;  %1054 = vmatmul.mubr.msk.bf16.gmra.mrb[12].mxu1 %vm116_vm0, %v83_v56 }
  0x2b   :  { %1033 = vmatprep.mubr.msk.bf16.mxu0 %vm116_vm0, %v72_v57  ;;  %1061 = vmatprep.mubr.msk.bf16.mxu1 %vm1163_vm1, %v1162_v22 }
  0x32   :  { %1034 = vmatmul.mubr.msk.bf16.gmra.mrb[16].mxu0 %vm116_vm0, %v73_v62  ;;  %1062 = vmatmul.mubr.msk.bf16.vlgmr.msra.gmra.mrb[16].mxu1 %vm400_vm2, %v1081_v63 }
  0x33   :  { %1037 = vmatprep.mubr.msk.bf16.mxu0 %vm116_vm0, %v74_v0 }
  0x3a   :  { %1038 = vmatmul.mubr.msk.bf16.gmra.mrb[20].mxu0 %vm116_vm0, %v75_v3 }
  0xe5   :  { %v1361_v4 = vpop.f32.mrb[0].mxu1  ;;  %v1019_v5 = vpop.f32.mrb[0].mxu0 }
  0xe6   :  { %v307_v6 = vpop.f32.mrb[1].mxu1  ;;  %v211_v7 = vpop.f32.mrb[1].mxu0 }
  0xe7   :  { %v1363_v8 = vpop.f32.mrb[2].mxu1  ;;  %v1020_v9 = vpop.f32.mrb[2].mxu0 }
  0xe8   :  { %v310_v10 = vpop.f32.mrb[3].mxu1  ;;  %v1365_v11 = vpop.f32.mrb[3].mxu0 }
  0xed   :  { %v1367_v12 = vpop.f32.mrb[4].mxu1  ;;  %v1023_v13 = vpop.f32.mrb[4].mxu0 }
  0xee   :  { %v1369_v14 = vpop.f32.mrb[5].mxu1  ;;  %v227_v15 = vpop.f32.mrb[5].mxu0 }
  0xef   :  { %v1371_v16 = vpop.f32.mrb[6].mxu1  ;;  %v1024_v17 = vpop.f32.mrb[6].mxu0 }
  0xf0   :  { %v1373_v18 = vpop.f32.mrb[7].mxu1  ;;  %v230_v19 = vpop.f32.mrb[7].mxu0 }
  0xf5   :  { %v1051_v20 = vpop.f32.mrb[8].mxu1  ;;  %v1027_v21 = vpop.f32.mrb[8].mxu0 }
  0xf6   :  { %v339_v22 = vpop.f32.mrb[9].mxu1  ;;  %v243_v23 = vpop.f32.mrb[9].mxu0 }
  0xf7   :  { %v1052_v24 = vpop.f32.mrb[10].mxu1  ;;  %v1028_v25 = vpop.f32.mrb[10].mxu0 }
  0xf8   :  { %v342_v26 = vpop.f32.mrb[11].mxu1  ;;  %v246_v27 = vpop.f32.mrb[11].mxu0 }
  0xfd   :  { %v1375_v28 = vpop.f32.mrb[12].mxu1  ;;  %v1377_v29 = vpop.f32.mrb[12].mxu0 }
  0xfe   :  { %v355_v30 = vpop.f32.mrb[13].mxu1  ;;  %v259_v31 = vpop.f32.mrb[13].mxu0 }
  0xff   :  { %v1379_v32 = vpop.f32.mrb[14].mxu1  ;;  %v1381_v33 = vpop.f32.mrb[14].mxu0 }
 0x100   :  { %v358_v34 = vpop.f32.mrb[15].mxu1  ;;  %v262_v35 = vpop.f32.mrb[15].mxu0 }
 0x105   :  { %v438_v37 = vpop.f32.mrb[16].mxu1  ;;  %v1035_v38 = vpop.f32.mrb[16].mxu0 }
 0x106   :  { %v439_v39 = vadd.f32 %v976_v36, %v438_v37  ;;  %v1063_v40 = vpop.f32.mrb[17].mxu1  ;;  %v275_v41 = vpop.f32.mrb[17].mxu0 }
 0x107   :  { %v441_v42 = vpop.f32.mrb[18].mxu1  ;;  %v1036_v43 = vpop.f32.mrb[18].mxu0 }
 0x108   :  { %v463_v44 = vadd.f32 %v1035_v38, %v439_v39  ;;  %v461_v45 = vadd.f32 %v439_v39, %v275_v41  ;;  %v442_v46 = vadd.f32 %v976_v36, %v441_v42  ;;  %v1064_v47 = vpop.f32.mrb[19].mxu1  ;;  %v278_v48 = vpop.f32.mrb[19].mxu0  ;;  %v447_v49 = vadd.f32 %v1019_v5, %v439_v39 }
 0x109   :  { %v445_v50 = vadd.f32 %v439_v39, %v211_v7  ;;  %v449_v51 = vadd.f32 %v439_v39, %v227_v15  ;;  %v1386_v52 = vadd.f32 %v1023_v13, %v439_v39  ;;  %v1388_v53 = vadd.f32 %v439_v39, %v243_v23 }
 0x10a   :  { %v464_v54 = vadd.f32 %v1036_v43, %v442_v46  ;;  %v462_v55 = vadd.f32 %v442_v46, %v278_v48  ;;  %v448_v56 = vadd.f32 %v1020_v9, %v442_v46  ;;  %1082 = vtanh.f32 %v463_v44 }
 0x10b   :  { %v1390_v57 = vadd.f32 %v442_v46, %v230_v19  ;;  %v1392_v58 = vadd.f32 %v1024_v17, %v442_v46  ;;  %v1394_v59 = vadd.f32 %v439_v39, %v307_v6  ;;  %1084 = vtanh.f32 %v461_v45 }
 0x10c   :  { %v1396_v60 = vadd.f32 %v442_v46, %v246_v27  ;;  %v1398_v61 = vadd.f32 %v1027_v21, %v439_v39  ;;  %v1400_v62 = vadd.f32 %v442_v46, %v310_v10  ;;  %1086 = vtanh.f32 %v462_v55 }
 0x10d   :  { %v1039_v63 = vpop.f32.mrb[20].mxu0  ;;  %v1403_v0 = vadd.f32 %v1361_v4, %v439_v39  ;;  %v1405_v1 = vadd.f32 %v1028_v25, %v442_v46  ;;  %v1407_v2 = vadd.f32 %v439_v39, %v339_v22  ;;  %1088 = vtanh.f32 %v447_v49 }
 0x10e   :  { %v467_v3 = vadd.f32 %v1039_v63, %v439_v39  ;;  %v291_v5 = vpop.f32.mrb[21].mxu0  ;;  %v1410_v6 = vadd.f32 %v1363_v8, %v442_v46  ;;  %v1412_v7 = vadd.f32 %v1051_v20, %v439_v39  ;;  %1090 = vtanh.f32 %v445_v50 }
 0x10f   :  { %v465_v9 = vadd.f32 %v439_v39, %v291_v5  ;;  %v1040_v10 = vpop.f32.mrb[22].mxu0  ;;  %v1414_v13 = vadd.f32 %v442_v46, %v342_v26  ;;  %v1416_v15 = vadd.f32 %v439_v39, %v259_v31  ;;  %v1418_v19 = vadd.f32 %v1052_v24, %v442_v46 }
 0x110   :  { %1092 = vtanh.f32 %v467_v3  ;;  %v468_v4 = vadd.f32 %v1040_v10, %v442_v46  ;;  %v294_v17 = vpop.f32.mrb[23].mxu0  ;;  %v1421_v21 = vadd.f32 %v439_v39, %v1369_v14  ;;  %v1423_v22 = vadd.f32 %v442_v46, %v262_v35 }
 0x111   :  { %1094 = vtanh.f32 %v465_v9  ;;  %v466_v8 = vadd.f32 %v442_v46, %v294_v17  ;;  %v1425_v20 = vadd.f32 %v439_v39, %v355_v30  ;;  %v1428_v23 = vadd.f32 %v442_v46, %v1373_v18 }
 0x112   :  { %1096 = vtanh.f32 %v468_v4  ;;  %v1431_v25 = vadd.f32 %v1377_v29, %v439_v39  ;;  %v1433_v26 = vadd.f32 %v442_v46, %v358_v34  ;;  %v1436_v24 = vadd.f32 %v442_v46, %v1365_v11  ;;  %v1456_v11 = vld [vmem:[%s1750_s5] ss:$0 sm:$0xff] }
 0x113   :  { %1098 = vtanh.f32 %v466_v8  ;;  %v1439_v14 = vadd.f32 %v1381_v33, %v442_v46  ;;  %v1442_v27 = vadd.f32 %v1367_v12, %v439_v39  ;;  %v1445_v30 = vadd.f32 %v1371_v16, %v442_v46 }
 0x114   :  { %1100 = vtanh.f32 %v448_v56  ;;  %v1448_v18 = vadd.f32 %v1375_v28, %v439_v39  ;;  %v1451_v29 = vadd.f32 %v1379_v32, %v442_v46  ;;  %v1083_v31 = vpop.eup %1082 }
 0x115   :  { %v1085_v34 = vpop.eup %1084  ;;  %1102 = vtanh.f32 %v449_v51  ;;  %v550_v49 = vmul.f32 %v1083_v31, %v1456_v11 }
 0x116   :  { %v1087_v33 = vpop.eup %1086  ;;  %1104 = vtanh.f32 %v464_v54  ;;  %v548_v41 = vmul.f32 %v1085_v34, %v1456_v11 }
 0x117   :  { %v1089_v12 = vpop.eup %1088  ;;  %1106 = vtanh.f32 %v1386_v52  ;;  %v549_v52 = vmul.f32 %v1087_v33, %v1456_v11  ;;  %v626_v55 = vsel %vm400_vm2, %v550_v49, 0.0 }
 0x118   :  { %v1091_v35 = vpop.eup %1090  ;;  %v534_v16 = vmul.f32 %v1089_v12, %v1456_v11  ;;  %1108 = vtanh.f32 %v1390_v57  ;;  %v620_v48 = vsel %vm400_vm2, %v548_v41, 0.0 }
 0x119   :  { %v532_v28 = vmul.f32 %v1091_v35, %v1456_v11  ;;  %1110 = vtanh.f32 %v1388_v53  ;;  %v623_v57 = vsel %vm400_vm2, %v549_v52, 0.0 }
 0x11a   :  { %v1093_v36 = vpop.eup %1092  ;;  %v578_v32 = vsel %vm400_vm2, %v534_v16, 0.0  ;;  %1112 = vtanh.f32 %v1392_v58 }
 0x11b   :  { %v1095_v37 = vpop.eup %1094  ;;  %v1463_v38 = vmul.f32 %v1093_v36, %v1456_v11  ;;  %579 = vadd.xlane.f32.xlu1 %v578_v32  ;;  %v572_v40 = vsel %vm400_vm2, %v532_v28, 0.0  ;;  %1114 = vtanh.f32 %v1394_v59 }
 0x11c   :  { %v1097_v39 = vpop.eup %1096  ;;  %v1469_v42 = vmul.f32 %v1095_v37, %v1456_v11  ;;  %573 = vadd.xlane.f32.xlu0 %v572_v40  ;;  %1116 = vtanh.f32 %v1396_v60 }
 0x11d   :  { %v1099_v43 = vpop.eup %1098  ;;  %v1472_v44 = vmul.f32 %v1097_v39, %v1456_v11  ;;  %1118 = vtanh.f32 %v1398_v61 }
 0x11e   :  { %v1101_v45 = vpop.eup %1100  ;;  %v1475_v46 = vmul.f32 %v1099_v43, %v1456_v11  ;;  %1120 = vtanh.f32 %v1400_v62 }
 0x11f   :  { %v535_v47 = vmul.f32 %v1101_v45, %v1456_v11  ;;  %v1103_v50 = vpop.eup %1102  ;;  %1122 = vtanh.f32 %v1403_v0 }
 0x120   :  { %621 = vadd.xlane.f32.xlu0 %v620_v48  ;;  %v1105_v54 = vpop.eup %1104  ;;  %v536_v53 = vmul.f32 %v1103_v50, %v1456_v11  ;;  %1124 = vtanh.f32 %v1405_v1 }
 0x121   :  { %v581_v51 = vsel %vm400_vm2, %v535_v47, 0.0  ;;  %v1107_v56 = vpop.eup %1106  ;;  %v551_v58 = vmul.f32 %v1105_v54, %v1456_v11  ;;  %1126 = vtanh.f32 %v1407_v2 }
 0x122   :  { %582 = vadd.xlane.f32.xlu1 %v581_v51  ;;  %v1109_v63 = vpop.eup %1108  ;;  %v584_v3 = vsel %vm400_vm2, %v536_v53, 0.0  ;;  %v538_v59 = vmul.f32 %v1107_v56, %v1456_v11  ;;  %1128 = vtanh.f32 %v1410_v6 }
 0x123   :  { %v1111_v5 = vpop.eup %1110  ;;  %v629_v60 = vsel %vm400_vm2, %v551_v58, 0.0  ;;  %v537_v9 = vmul.f32 %v1109_v63, %v1456_v11  ;;  %1130 = vtanh.f32 %v1442_v27 }
 0x124   :  { %627 = vadd.xlane.f32.xlu0 %v626_v55  ;;  %v1113_v10 = vpop.eup %1112  ;;  %v590_v61 = vsel %vm400_vm2, %v538_v59, 0.0  ;;  %v540_v4 = vmul.f32 %v1111_v5, %v1456_v11  ;;  %1132 = vtanh.f32 %v1445_v30 }
 0x125   :  { %v1115_v17 = vpop.eup %1114  ;;  %v587_v62 = vsel %vm400_vm2, %v537_v9, 0.0  ;;  %v539_v8 = vmul.f32 %v1113_v10, %v1456_v11  ;;  %1134 = vtanh.f32 %v1448_v18 }
 0x126   :  { %624 = vadd.xlane.f32.xlu1 %v623_v57  ;;  %v1117_v31 = vpop.eup %1116  ;;  %v596_v0 = vsel %vm400_vm2, %v540_v4, 0.0  ;;  %v556_v1 = vmul.f32 %v1115_v17, %v1456_v11  ;;  %1136 = vtanh.f32 %v1451_v29 }
 0x127   :  { %v1119_v2 = vpop.eup %1118  ;;  %v593_v34 = vsel %vm400_vm2, %v539_v8, 0.0  ;;  %v541_v33 = vmul.f32 %v1117_v31, %v1456_v11  ;;  %1138 = vtanh.f32 %v1412_v7 }
 0x128   :  { %585 = vadd.xlane.f32.xlu0 %v584_v3  ;;  %v1121_v6 = vpop.eup %1120  ;;  %v644_v30 = vsel %vm400_vm2, %v556_v1, 0.0  ;;  %v542_v12 = vmul.f32 %v1119_v2, %v1456_v11  ;;  %1140 = vtanh.f32 %v1414_v13 }
 0x129   :  { %v1123_v27 = vpop.eup %1122  ;;  %v599_v35 = vsel %vm400_vm2, %v541_v33, 0.0  ;;  %v557_v16 = vmul.f32 %v1121_v6, %v1456_v11  ;;  %1142 = vtanh.f32 %v1416_v15 }
 0x12a   :  { %630 = vadd.xlane.f32.xlu1 %v629_v60  ;;  %v1125_v18 = vpop.eup %1124  ;;  %v602_v7 = vsel %vm400_vm2, %v542_v12, 0.0  ;;  %v558_v37 = vmul.f32 %v1123_v27, %v1456_v11  ;;  %1144 = vtanh.f32 %v1418_v19 }
 0x12b   :  { %v1127_v36 = vpop.eup %1126  ;;  %v647_v13 = vsel %vm400_vm2, %v557_v16, 0.0  ;;  %v543_v39 = vmul.f32 %v1125_v18, %v1456_v11  ;;  %1146 = vtanh.f32 %v1421_v21  ;;  %v638_v18 = vsel %vm400_vm2, %v1463_v38, 0.0 }
 0x12c   :  { %591 = vadd.xlane.f32.xlu0 %v590_v61  ;;  %v1129_v29 = vpop.eup %1128  ;;  %v650_v19 = vsel %vm400_vm2, %v558_v37, 0.0  ;;  %v564_v47 = vmul.f32 %v1127_v36, %v1456_v11  ;;  %1148 = vtanh.f32 %v1423_v22  ;;  %v632_v16 = vsel %vm400_vm2, %v1469_v42, 0.0 }
 0x12d   :  { %v1131_v28 = vpop.eup %1130  ;;  %v605_v50 = vsel %vm400_vm2, %v543_v39, 0.0  ;;  %v559_v51 = vmul.f32 %v1129_v29, %v1456_v11  ;;  %1150 = vtanh.f32 %v1425_v20 }
 0x12e   :  { %588 = vadd.xlane.f32.xlu1 %v587_v62  ;;  %v1133_v32 = vpop.eup %1132  ;;  %v1525_v40 = vmul.f32 %v1131_v28, %v1456_v11  ;;  %v668_v21 = vsel %vm400_vm2, %v564_v47, 0.0  ;;  %1152 = vtanh.f32 %v1428_v23 }
 0x12f   :  { %v1135_v41 = vpop.eup %1134  ;;  %v1528_v15 = vmul.f32 %v1133_v32, %v1456_v11  ;;  %v653_v55 = vsel %vm400_vm2, %v559_v51, 0.0  ;;  %1154 = vtanh.f32 %v1431_v25 }
 0x130   :  { %597 = vadd.xlane.f32.xlu0 %v596_v0  ;;  %v1137_v43 = vpop.eup %1136  ;;  %v1532_v45 = vmul.f32 %v1135_v41, %v1456_v11  ;;  %1156 = vtanh.f32 %v1433_v26  ;;  %v662_v36 = vsel %vm400_vm2, %v1525_v40, 0.0 }
 0x131   :  { %v1538_v48 = vmul.f32 %v1137_v43, %v1456_v11  ;;  %v1139_v49 = vpop.eup %1138  ;;  %1158 = vtanh.f32 %v1436_v24  ;;  %v665_v38 = vsel %vm400_vm2, %v1528_v15, 0.0 }
 0x132   :  { %594 = vadd.xlane.f32.xlu1 %v593_v34  ;;  %v1141_v52 = vpop.eup %1140  ;;  %v566_v54 = vmul.f32 %v1139_v49, %v1456_v11  ;;  %1160 = vtanh.f32 %v1439_v14 }
 0x133   :  { %v1143_v22 = vpop.eup %1142  ;;  %v565_v53 = vmul.f32 %v1141_v52, %v1456_v11  ;;  %v689_v42 = vsel %vm400_vm2, %v1538_v48, 0.0 }
 0x134   :  { %645 = vadd.xlane.f32.xlu0 %v644_v30  ;;  %v1145_v56 = vpop.eup %1144  ;;  %v674_v57 = vsel %vm400_vm2, %v566_v54, 0.0  ;;  %v544_v20 = vmul.f32 %v1143_v22, %v1456_v11  ;;  %v732_v22 = vlaneseq }
 0x135   :  { %v1147_v58 = vpop.eup %1146  ;;  %v671_v23 = vsel %vm400_vm2, %v565_v53, 0.0  ;;  %v567_v63 = vmul.f32 %v1145_v56, %v1456_v11 }
 0x136   :  { %600 = vadd.xlane.f32.xlu1 %v599_v35  ;;  %v1149_v3 = vpop.eup %1148  ;;  %v608_v59 = vsel %vm400_vm2, %v544_v20, 0.0  ;;  %v560_v25 = vmul.f32 %v1147_v58, %v1456_v11  ;;  %v641_v35 = vsel %vm400_vm2, %v1472_v44, 0.0  ;;  %v686_v44 = vsel %vm400_vm2, %v1532_v45, 0.0 }
 0x137   :  { %v1151_v5 = vpop.eup %1150  ;;  %v677_v26 = vsel %vm400_vm2, %v567_v63, 0.0  ;;  %v545_v60 = vmul.f32 %v1149_v3, %v1456_v11  ;;  %v733_v56 = vand.u32 127, %v732_v22 }
 0x138   :  { %603 = vadd.xlane.f32.xlu0 %v602_v7  ;;  %v1153_v9 = vpop.eup %1152  ;;  %v656_v10 = vsel %vm400_vm2, %v560_v25, 0.0  ;;  %v568_v61 = vmul.f32 %v1151_v5, %v1456_v11 }
 0x139   :  { %v1155_v4 = vpop.eup %1154  ;;  %v611_v24 = vsel %vm400_vm2, %v545_v60, 0.0  ;;  %v561_v17 = vmul.f32 %v1153_v9, %v1456_v11  ;;  %v738_v58 = vadd.s32 4294967288, %v733_v56 }
 0x13a   :  { %648 = vadd.xlane.f32.xlu1 %v647_v13  ;;  %v1157_v62 = vpop.eup %1156  ;;  %v680_v14 = vsel %vm400_vm2, %v568_v61, 0.0  ;;  %v546_v8 = vmul.f32 %v1155_v4, %v1456_v11 }
 0x13b   :  { %v1159_v31 = vpop.eup %1158  ;;  %v659_v0 = vsel %vm400_vm2, %v561_v17, 0.0  ;;  %v569_v1 = vmul.f32 %v1157_v62, %v1456_v11 }
 0x13c   :  { %651 = vadd.xlane.f32.xlu0 %v650_v19  ;;  %v1161_v2 = vpop.eup %1160  ;;  %v614_v34 = vsel %vm400_vm2, %v546_v8, 0.0  ;;  %v533_v33 = vmul.f32 %v1159_v31, %v1456_v11 }
 0x13d   :  { %v683_v6 = vsel %vm400_vm2, %v569_v1, 0.0  ;;  %v547_v27 = vmul.f32 %v1161_v2, %v1456_v11  ;;  %v635_v11 = vsel %vm400_vm2, %v1475_v46, 0.0 }
 0x13e   :  { %606 = vadd.xlane.f32.xlu1 %v605_v50  ;;  %v575_v30 = vsel %vm400_vm2, %v533_v33, 0.0 }
 0x13f   :  { %v617_v12 = vsel %vm400_vm2, %v547_v27, 0.0 }
 0x140   :  { %669 = vadd.xlane.f32.xlu0 %v668_v21 }
 0x142   :  { %654 = vadd.xlane.f32.xlu1 %v653_v55 }
 0x144   :  { %675 = vadd.xlane.f32.xlu0 %v674_v57 }
 0x146   :  { %672 = vadd.xlane.f32.xlu1 %v671_v23  ;;  %v735_v23 = vshrl.u32 %v732_v22, 7 }
 0x148   :  { %609 = vadd.xlane.f32.xlu0 %v608_v59  ;;  %v1630_v59 = vsub.s32 %v738_v58, %v735_v23  ;;  %v1632_v25 = vsub.s32 %v733_v56, %v735_v23 }
 0x14a   :  { %678 = vadd.xlane.f32.xlu1 %v677_v26 }
 0x14c   :  { %657 = vadd.xlane.f32.xlu0 %v656_v10 }
 0x14e   :  { %612 = vadd.xlane.f32.xlu1 %v611_v24 }
 0x150   :  { %681 = vadd.xlane.f32.xlu0 %v680_v14 }
 0x152   :  { %660 = vadd.xlane.f32.xlu1 %v659_v0 }
 0x154   :  { %615 = vadd.xlane.f32.xlu0 %v614_v34 }
 0x156   :  { %684 = vadd.xlane.f32.xlu1 %v683_v6 }
 0x158   :  { %576 = vadd.xlane.f32.xlu0 %v575_v30 }
 0x15a   :  { %618 = vadd.xlane.f32.xlu1 %v617_v12 }
 0x15c   :  { %639 = vadd.xlane.f32.xlu0 %v638_v18 }
 0x15e   :  { %642 = vadd.xlane.f32.xlu1 %v641_v35 }
 0x160   :  { %633 = vadd.xlane.f32.xlu0 %v632_v16 }
 0x162   :  { %636 = vadd.xlane.f32.xlu1 %v635_v11 }
 0x164   :  { %663 = vadd.xlane.f32.xlu0 %v662_v36 }
 0x166   :  { %666 = vadd.xlane.f32.xlu1 %v665_v38 }
 0x168   :  { %687 = vadd.xlane.f32.xlu0 %v686_v44 }
 0x16a   :  { %690 = vadd.xlane.f32.xlu1 %v689_v42 }
 0x1a8   :  { %v580_v29 = vpop.xlane.xlu1 %579 }
 0x1a9   :  { %v1590_v28 = vpop.xlane.xlu0 %573  ;;  %v748_v10 = vrot.slane %v580_v29, %v1632_v25 }
 0x1aa   :  { %v737_v61 = vrot.slane %v1590_v28, %v1632_v25 }
 0x1ad   :  { %v1592_v46 = vpop.xlane.xlu0 %621 }
 0x1ae   :  { %v811_v24 = vrot.slane %v1592_v46, %v1632_v25 }
 0x1af   :  { %v583_v7 = vpop.xlane.xlu1 %582 }
 0x1b0   :  { %v752_v60 = vrot.slane %v583_v7, %v1630_v59 }
 0x1b1   :  { %v1594_v37 = vpop.xlane.xlu0 %627 }
 0x1b2   :  { %v753_v31 = vsel %vm743_vm3, %v752_v60, %v748_v10  ;;  %v820_v0 = vrot.slane %v1594_v37, %v1632_v25 }
 0x1b3   :  { %v1596_v32 = vpop.xlane.xlu1 %624 }
 0x1b4   :  { %v815_v11 = vrot.slane %v1596_v32, %v1630_v59 }
 0x1b5   :  { %v586_v13 = vpop.xlane.xlu0 %585 }
 0x1b6   :  { %v757_v17 = vrot.slane %v586_v13, %v1632_v25  ;;  %v816_v56 = vsel %vm743_vm3, %v815_v11, %v811_v24 }
 0x1b7   :  { %v1598_v39 = vpop.xlane.xlu1 %630 }
 0x1b8   :  { %v824_v1 = vrot.slane %v1598_v39, %v1630_v59 }
 0x1b9   :  { %v1600_v40 = vpop.xlane.xlu0 %591 }
 0x1ba   :  { %v766_v34 = vrot.slane %v1600_v40, %v1632_v25  ;;  %v825_v37 = vsel %vm743_vm3, %v824_v1, %v820_v0 }
 0x1bb   :  { %v589_v41 = vpop.xlane.xlu1 %588  ;;  %v930_v58 = vsel %vm916_vm4, %v825_v37, %v816_v56 }
 0x1bc   :  { %v761_v9 = vrot.slane %v589_v41, %v1630_v59 }
 0x1bd   :  { %v1602_v15 = vpop.xlane.xlu0 %597 }
 0x1be   :  { %v762_v33 = vsel %vm743_vm3, %v761_v9, %v757_v17  ;;  %v775_v30 = vrot.slane %v1602_v15, %v1632_v25 }
 0x1bf   :  { %v595_v43 = vpop.xlane.xlu1 %594 }
 0x1c0   :  { %v770_v62 = vrot.slane %v595_v43, %v1630_v59 }
 0x1c1   :  { %v1604_v45 = vpop.xlane.xlu0 %645 }
 0x1c2   :  { %v771_v36 = vsel %vm743_vm3, %v770_v62, %v766_v34  ;;  %v847_v40 = vrot.slane %v1604_v45, %v1632_v25 }
 0x1c3   :  { %v601_v19 = vpop.xlane.xlu1 %600 }
 0x1c4   :  { %v779_v2 = vrot.slane %v601_v19, %v1630_v59 }
 0x1c5   :  { %v1606_v47 = vpop.xlane.xlu0 %603 }
 0x1c6   :  { %v784_v38 = vrot.slane %v1606_v47, %v1632_v25  ;;  %v780_v29 = vsel %vm743_vm3, %v779_v2, %v775_v30 }
 0x1c7   :  { %v1608_v48 = vpop.xlane.xlu1 %648 }
 0x1c8   :  { %v851_v32 = vrot.slane %v1608_v48, %v1630_v59 }
 0x1c9   :  { %v1610_v49 = vpop.xlane.xlu0 %651 }
 0x1ca   :  { %v852_v23 = vsel %vm743_vm3, %v851_v32, %v847_v40 }
 0x1cb   :  { %v1612_v50 = vpop.xlane.xlu1 %606 }
 0x1cc   :  { %v788_v6 = vrot.slane %v1612_v50, %v1630_v59 }
 0x1cd   :  { %v1614_v51 = vpop.xlane.xlu0 %669 }
 0x1ce   :  { %v789_v13 = vsel %vm743_vm3, %v788_v6, %v784_v38 }
 0x1cf   :  { %v1616_v52 = vpop.xlane.xlu1 %654 }
 0x1d0   :  { %v860_v60 = vrot.slane %v1616_v52, %v1630_v59 }
 0x1d1   :  { %v1618_v21 = vpop.xlane.xlu0 %675 }
 0x1d2   :  { %v892_v9 = vrot.slane %v1618_v21, %v1632_v25 }
 0x1d3   :  { %v1620_v54 = vpop.xlane.xlu1 %672 }
 0x1d4   :  { %v887_v21 = vrot.slane %v1620_v54, %v1630_v59 }
 0x1d5   :  { %v610_v55 = vpop.xlane.xlu0 %609 }
 0x1d6   :  { %v793_v28 = vrot.slane %v610_v55, %v1632_v25 }
 0x1d7   :  { %v1622_v53 = vpop.xlane.xlu1 %678 }
 0x1d8   :  { %v896_v10 = vrot.slane %v1622_v53, %v1630_v59 }
 0x1d9   :  { %v1624_v57 = vpop.xlane.xlu0 %657 }
 0x1da   :  { %v865_v53 = vrot.slane %v1624_v57, %v1632_v25  ;;  %v897_v2 = vsel %vm743_vm3, %v896_v10, %v892_v9 }
 0x1db   :  { %v613_v20 = vpop.xlane.xlu1 %612 }
 0x1dc   :  { %v797_v12 = vrot.slane %v613_v20, %v1630_v59 }
 0x1dd   :  { %v1626_v63 = vpop.xlane.xlu0 %681 }
 0x1de   :  { %v798_v41 = vsel %vm743_vm3, %v797_v12, %v793_v28  ;;  %v901_v0 = vrot.slane %v1626_v63, %v1632_v25 }
 0x1df   :  { %v1628_v3 = vpop.xlane.xlu1 %660 }
 0x1e1   :  { %v616_v5 = vpop.xlane.xlu0 %615 }
 0x1e2   :  { %v802_v46 = vrot.slane %v616_v5, %v1632_v25  ;;  %v856_v5 = vrot.slane %v1610_v49, %v1632_v25 }
 0x1e3   :  { %v1634_v26 = vpop.xlane.xlu1 %684 }
 0x1e4   :  { %v905_v52 = vrot.slane %v1634_v26, %v1630_v59  ;;  %v883_v26 = vrot.slane %v1614_v51, %v1632_v25 }
 0x1e5   :  { %v577_v4 = vpop.xlane.xlu0 %576 }
 0x1e6   :  { %v742_v14 = vrot.slane %v577_v4, %v1630_v59  ;;  %v906_v6 = vsel %vm743_vm3, %v905_v52, %v901_v0  ;;  %v888_v63 = vsel %vm743_vm3, %v887_v21, %v883_v26 }
 0x1e7   :  { %v619_v8 = vpop.xlane.xlu1 %618 }
 0x1e8   :  { %v744_v27 = vsel %vm743_vm3, %v742_v14, %v737_v61  ;;  %v806_v35 = vrot.slane %v619_v8, %v1630_v59  ;;  %v869_v61 = vrot.slane %v1628_v3, %v1630_v59 }
 0x1e9   :  { %v917_v18 = vsel %vm916_vm4, %v753_v31, %v744_v27  ;;  %v640_v16 = vpop.xlane.xlu0 %639  ;;  %v861_v31 = vsel %vm743_vm3, %v860_v60, %v856_v5 }
 0x1ea   :  { %v919_v44 = vsel %vm918_vm5, %v762_v33, %v917_v18  ;;  %v807_v43 = vsel %vm743_vm3, %v806_v35, %v802_v46  ;;  %v838_v50 = vrot.slane %v640_v16, %v1632_v25  ;;  %v870_v54 = vsel %vm743_vm3, %v869_v61, %v865_v53 }
 0x1eb   :  { %v643_v42 = vpop.xlane.xlu1 %642  ;;  %v921_v7 = vsel %vm920_vm6, %v771_v36, %v919_v44  ;;  %v937_v35 = vsel %vm916_vm4, %v897_v2, %v888_v63 }
 0x1ec   :  { %v923_v39 = vsel %vm922_vm7, %v780_v29, %v921_v7  ;;  %v842_v48 = vrot.slane %v643_v42, %v1630_v59  ;;  %v938_v16 = vsel %vm918_vm5, %v906_v6, %v937_v35 }
 0x1ed   :  { %v925_v15 = vsel %vm924_vm8, %v789_v13, %v923_v39  ;;  %v634_v19 = vpop.xlane.xlu0 %633 }
 0x1ee   :  { %v927_v47 = vsel %vm926_vm9, %v798_v41, %v925_v15  ;;  %v829_v22 = vrot.slane %v634_v19, %v1632_v25  ;;  %v843_v24 = vsel %vm743_vm3, %v842_v48, %v838_v50 }
 0x1ef   :  { %v637_v55 = vpop.xlane.xlu1 %636  ;;  %v929_v45 = vsel %vm928_vm10, %v807_v43, %v927_v47 }
 0x1f0   :  { %v833_v20 = vrot.slane %v637_v55, %v1630_v59  ;;  %944 = vst.msk [vmem:[%s1751_s6] sm:$0xff] %vm943_vm11, %v929_v45 }
 0x1f1   :  { %v664_v49 = vpop.xlane.xlu0 %663 }
 0x1f2   :  { %v834_v4 = vsel %vm743_vm3, %v833_v20, %v829_v22  ;;  %v874_v62 = vrot.slane %v664_v49, %v1632_v25 }
 0x1f3   :  { %v931_v17 = vsel %vm918_vm5, %v834_v4, %v930_v58  ;;  %v667_v14 = vpop.xlane.xlu1 %666 }
 0x1f4   :  { %v932_v3 = vsel %vm920_vm6, %v843_v24, %v931_v17  ;;  %v878_v8 = vrot.slane %v667_v14, %v1630_v59 }
 0x1f5   :  { %v933_v1 = vsel %vm922_vm7, %v852_v23, %v932_v3  ;;  %v688_v33 = vpop.xlane.xlu0 %687 }
 0x1f6   :  { %v934_v57 = vsel %vm924_vm8, %v861_v31, %v933_v1  ;;  %v879_v34 = vsel %vm743_vm3, %v878_v8, %v874_v62  ;;  %v910_v27 = vrot.slane %v688_v33, %v1632_v25 }
 0x1f7   :  { %v935_v51 = vsel %vm926_vm9, %v870_v54, %v934_v57  ;;  %v691_v30 = vpop.xlane.xlu1 %690 }
 0x1f8   :  { %v936_v12 = vsel %vm928_vm10, %v879_v34, %v935_v51  ;;  %v914_v18 = vrot.slane %v691_v30, %v1630_v59 }
 0x1f9   :  { %945 = vst.msk [vmem:[%s1751_s6 + $0x8] sm:$0xff] %vm943_vm11, %v936_v12 }
 0x1fa   :  { %v915_v11 = vsel %vm743_vm3, %v914_v18, %v910_v27 }
 0x1fb   :  { %v939_v25 = vsel %vm920_vm6, %v915_v11, %v938_v16 }
 0x1fc   :  { %947 = vst.msk [vmem:[%s1751_s6 + $0x10] sm:$0xf] %vm946_vm12, %v939_v25 }

</bundles_post_ra>
